<compile_context>
chip_gen: v5e
topology: v5e:2x2
jax: 0.10.0
libtpu: 0.0.40
codegen_flags: <defaults>
</compile_context>

<pallas_src>
import jax
import jax.numpy as jnp
from jax.experimental import pallas as pl
from jax.experimental.pallas import tpu as pltpu

_LANE = 128


def _round_up(n, m):
    return (n + m - 1) // m * m


def _mlp_kernel(x_ref, w1_ref, b1_ref, w2_ref, b2_ref, w3_ref, b3_ref,
                w4_ref, b4_ref, o_ref):
    # In-kernel cast of the unpadded f32 activations to bf16 (MXU operand).
    x = x_ref[...].astype(jnp.bfloat16)
    # Layer 1: Linear (bf16 x bf16 -> f32 MXU) + bias + ReLU in f32.
    h = jnp.dot(x, w1_ref[...], preferred_element_type=jnp.float32)
    h = jnp.maximum(h + b1_ref[...], 0.0).astype(jnp.bfloat16)
    # Layer 2
    h = jnp.dot(h, w2_ref[...], preferred_element_type=jnp.float32)
    h = jnp.maximum(h + b2_ref[...], 0.0).astype(jnp.bfloat16)
    # Layer 3
    h = jnp.dot(h, w3_ref[...], preferred_element_type=jnp.float32)
    h = jnp.maximum(h + b3_ref[...], 0.0).astype(jnp.bfloat16)
    # Output layer: Linear only; lane-dense bf16 store (128-wide, unmasked vst).
    out = jnp.dot(h, w4_ref[...], preferred_element_type=jnp.float32) + b4_ref[...]
    o_ref[...] = out.astype(o_ref.dtype)


def init_params(key, d_in, d_h1, d_h2, d_h3, d_out):
    """Deterministic synthetic init (PyTorch-style uniform bounds), f32,
    stored (in, out) so y = x @ W + b matches nn.Linear's x @ W.T + b."""
    dims = [(d_in, d_h1), (d_h1, d_h2), (d_h2, d_h3), (d_h3, d_out)]
    params = {}
    for i, (fan_in, fan_out) in enumerate(dims, start=1):
        key, kw, kb = jax.random.split(key, 3)
        bound = 1.0 / jnp.sqrt(jnp.float32(fan_in))
        params[f"w{i}"] = jax.random.uniform(
            kw, (fan_in, fan_out), jnp.float32, -bound, bound)
        params[f"b{i}"] = jax.random.uniform(
            kb, (1, fan_out), jnp.float32, -bound, bound)
    return params


def prepare_params(params):
    """Zero-pad feature dims to 128 lanes and cast weights to bf16.

    Layer 1 keeps its K dim UNPADDED so x can be read straight from HBM as
    raw (batch, d_in) f32.  All N dims (and K of layers 2-4) are padded to a
    multiple of 128 for lane-dense matmuls/stores.  Padding is exact: padded
    hidden units stay identically 0 through bias=0 + ReLU and multiply into
    zero weight rows downstream.  Biases stay f32 (elementwise VPU path)."""
    padded = {}
    for i in range(1, 5):
        w, b = params[f"w{i}"], params[f"b{i}"]
        fi, fo = w.shape
        fi_p = fi if i == 1 else _round_up(fi, _LANE)
        fo_p = _round_up(fo, _LANE)
        padded[f"w{i}"] = jnp.pad(
            w, ((0, fi_p - fi), (0, fo_p - fo))).astype(jnp.bfloat16)
        padded[f"b{i}"] = jnp.pad(
            b, ((0, 0), (0, fo_p - fo))).astype(jnp.float32)
    return padded


def classifier_forward(x, pparams, d_out, max_tile_b=2048):
    """Run the 4-layer MLP in one Pallas kernel, tiled over the batch dim.

    x: (batch, d_in) f32 (read unpadded; cast to bf16 in-kernel)
    pparams: lane-padded params from prepare_params()
    d_out: logical output width (pre-padding)
    """
    batch, d_in = x.shape
    assert pparams["w1"].shape[0] == d_in
    d_out_p = pparams["w4"].shape[1]

    # Batch tiling:
    #  - small batch: one tile covering the whole batch (full-dim block is
    #    always a legal block shape), grid = (1,).
    #  - large batch: 256-aligned tiles capped at max_tile_b, chosen so there
    #    are >=2 grid steps (v7x megacore sharding of the "parallel" axis).
    if batch <= 512:
        tile_b = batch
        batch_p = batch
    else:
        tile_b = min(max_tile_b, _round_up(pl.cdiv(batch, 2), 256))
        batch_p = _round_up(batch, tile_b)

    x_in = x if batch_p == batch else jnp.pad(x, ((0, batch_p - batch), (0, 0)))

    grid = (batch_p // tile_b,)
    x_map = lambda i: (i, 0)   # tiles over batch
    w_map = lambda i: (0, 0)   # weights/biases resident across all steps

    # Advisory cost estimate (f32 x read, bf16 params + output, padded FLOPs).
    args = [x_in]
    flops = 0
    bytes_accessed = x_in.size * 4 + batch_p * d_out_p * 2
    for li in range(1, 5):
        w, b = pparams[f"w{li}"], pparams[f"b{li}"]
        args.extend([w, b])
        flops += 2 * batch_p * w.shape[0] * w.shape[1]
        bytes_accessed += w.size * 2 + b.size * 4

    def _call(weight_pipeline_mode):
        in_specs = [pl.BlockSpec((tile_b, d_in), x_map)]
        for li in range(1, 5):
            w, b = pparams[f"w{li}"], pparams[f"b{li}"]
            if weight_pipeline_mode is None:
                in_specs.append(pl.BlockSpec(w.shape, w_map))
                in_specs.append(pl.BlockSpec(b.shape, w_map))
            else:
                in_specs.append(pl.BlockSpec(
                    w.shape, w_map, pipeline_mode=weight_pipeline_mode))
                in_specs.append(pl.BlockSpec(
                    b.shape, w_map, pipeline_mode=weight_pipeline_mode))
        return pl.pallas_call(
            _mlp_kernel,
            out_shape=jax.ShapeDtypeStruct((batch_p, d_out_p), jnp.bfloat16),
            grid=grid,
            in_specs=in_specs,
            out_specs=pl.BlockSpec((tile_b, d_out_p), x_map),
            compiler_params=pltpu.CompilerParams(
                dimension_semantics=("parallel",)),
            cost_estimate=pl.CostEstimate(
                flops=flops, transcendentals=0,
                bytes_accessed=bytes_accessed),
        )(*args)

    try:
        # Constant-index-map params never get re-fetched -> single-buffer them
        # to skip pointless double-buffer bookkeeping / VMEM.
        out_p = _call(pl.Buffered(1))
    except Exception:
        # Fallback: default (double) buffering if Buffered(1) is unsupported.
        out_p = _call(None)

    # Strip batch + lane padding and return logical f32 output outside kernel.
    return out_p[:batch, :d_out].astype(jnp.float32)


def _reference_forward(x, params):
    """Pure-JAX reference with the same bf16-operand / f32-accumulate math."""
    bf = lambda a: a.astype(jnp.bfloat16)
    h = x
    for i in range(1, 4):
        h = jnp.dot(bf(h), bf(params[f"w{i}"]),
                    preferred_element_type=jnp.float32)
        h = jnp.maximum(h + params[f"b{i}"], 0.0)
    return (jnp.dot(bf(h), bf(params["w4"]),
                    preferred_element_type=jnp.float32) + params["b4"])


if __name__ == "__main__":
    # param_dict equivalent:
    #   dnn_input_f1=32, dnn_hidden_f1=64, dnn_hidden_f2=64,
    #   dnn_hidden_f3=32, dnn_output=16
    batch, d_in, d_h1, d_h2, d_h3, d_out = 8, 32, 64, 64, 32, 16

    key = jax.random.PRNGKey(0)
    key, kx = jax.random.split(key)
    x = jax.random.normal(kx, (batch, d_in), dtype=jnp.float32)
    params = init_params(key, d_in, d_h1, d_h2, d_h3, d_out)
    pparams = prepare_params(params)

    out = classifier_forward(x, pparams, d_out)
    out = jax.block_until_ready(out)

    ref = _reference_forward(x, params)
    assert out.shape == (batch, d_out)
    assert out.dtype == jnp.float32
    max_err = float(jnp.max(jnp.abs(out - ref)))
    # bf16 output store adds ~0.4% relative rounding on top of the bf16-operand
    # reference math.
    assert jnp.allclose(out, ref, atol=2e-2, rtol=2e-2), max_err

    print("KERNEL_OK")
</pallas_src>

<mosaic_0001>
module attributes {stable_mosaic.version = 11 : i64} {
  func.func @_mlp_kernel(%arg0: i32, %arg1: memref<8x32xf32, #tpu.memory_space<vmem>>, %arg2: memref<32x128xbf16, #tpu.memory_space<vmem>>, %arg3: memref<1x128xf32, #tpu.memory_space<vmem>>, %arg4: memref<128x128xbf16, #tpu.memory_space<vmem>>, %arg5: memref<1x128xf32, #tpu.memory_space<vmem>>, %arg6: memref<128x128xbf16, #tpu.memory_space<vmem>>, %arg7: memref<1x128xf32, #tpu.memory_space<vmem>>, %arg8: memref<128x128xbf16, #tpu.memory_space<vmem>>, %arg9: memref<1x128xf32, #tpu.memory_space<vmem>>, %arg10: memref<8x128xbf16, #tpu.memory_space<vmem>>) attributes {dimension_semantics = [#tpu.dimension_semantics<parallel>], iteration_bounds = array<i64: 1>, scalar_prefetch = 0 : i64, scratch_operands = 0 : i64, tpu.core_type = #tpu.core_type<tc>, window_params = [{transform_indices = @transform_0, window_bounds = array<i64: 8, 32>}, {pipeline_mode = #tpu.pipeline_mode<synchronous>, transform_indices = @transform_1, window_bounds = array<i64: 32, 128>}, {pipeline_mode = #tpu.pipeline_mode<synchronous>, transform_indices = @transform_2, window_bounds = array<i64: 1, 128>}, {pipeline_mode = #tpu.pipeline_mode<synchronous>, transform_indices = @transform_3, window_bounds = array<i64: 128, 128>}, {pipeline_mode = #tpu.pipeline_mode<synchronous>, transform_indices = @transform_4, window_bounds = array<i64: 1, 128>}, {pipeline_mode = #tpu.pipeline_mode<synchronous>, transform_indices = @transform_5, window_bounds = array<i64: 128, 128>}, {pipeline_mode = #tpu.pipeline_mode<synchronous>, transform_indices = @transform_6, window_bounds = array<i64: 1, 128>}, {pipeline_mode = #tpu.pipeline_mode<synchronous>, transform_indices = @transform_7, window_bounds = array<i64: 128, 128>}, {pipeline_mode = #tpu.pipeline_mode<synchronous>, transform_indices = @transform_8, window_bounds = array<i64: 1, 128>}, {transform_indices = @transform_9, window_bounds = array<i64: 8, 128>}]} {
    %c0 = arith.constant 0 : index
    %c0_0 = arith.constant 0 : index
    %0 = vector.load %arg1[%c0, %c0_0] : memref<8x32xf32, #tpu.memory_space<vmem>>, vector<8x32xf32>
    %1 = arith.truncf %0 : vector<8x32xf32> to vector<8x32xbf16>
    %c0_1 = arith.constant 0 : index
    %c0_2 = arith.constant 0 : index
    %2 = vector.load %arg2[%c0_1, %c0_2] : memref<32x128xbf16, #tpu.memory_space<vmem>>, vector<32x128xbf16>
    %cst = arith.constant dense<0.000000e+00> : vector<8x128xf32>
    %3 = tpu.matmul %1, %2, %cst {dimension_numbers = #tpu.dot_dimension_numbers<[1], [0], [0], [1], [0, 0, 1, 1], [], []>} : vector<8x32xbf16>, vector<32x128xbf16>, vector<8x128xf32> -> vector<8x128xf32>
    %c0_3 = arith.constant 0 : index
    %c0_4 = arith.constant 0 : index
    %4 = vector.load %arg3[%c0_3, %c0_4] : memref<1x128xf32, #tpu.memory_space<vmem>>, vector<1x128xf32>
    %5 = vector.broadcast %4 : vector<1x128xf32> to vector<8x128xf32>
    %6 = arith.addf %3, %5 : vector<8x128xf32>
    %cst_5 = arith.constant 0.000000e+00 : f32
    %7 = vector.broadcast %cst_5 : f32 to vector<8x128xf32>
    %8 = arith.maximumf %6, %7 : vector<8x128xf32>
    %9 = arith.truncf %8 : vector<8x128xf32> to vector<8x128xbf16>
    %c0_6 = arith.constant 0 : index
    %c0_7 = arith.constant 0 : index
    %10 = vector.load %arg4[%c0_6, %c0_7] : memref<128x128xbf16, #tpu.memory_space<vmem>>, vector<128x128xbf16>
    %cst_8 = arith.constant dense<0.000000e+00> : vector<8x128xf32>
    %11 = tpu.matmul %9, %10, %cst_8 {dimension_numbers = #tpu.dot_dimension_numbers<[1], [0], [0], [1], [0, 0, 1, 1], [], []>} : vector<8x128xbf16>, vector<128x128xbf16>, vector<8x128xf32> -> vector<8x128xf32>
    %c0_9 = arith.constant 0 : index
    %c0_10 = arith.constant 0 : index
    %12 = vector.load %arg5[%c0_9, %c0_10] : memref<1x128xf32, #tpu.memory_space<vmem>>, vector<1x128xf32>
    %13 = vector.broadcast %12 : vector<1x128xf32> to vector<8x128xf32>
    %14 = arith.addf %11, %13 : vector<8x128xf32>
    %cst_11 = arith.constant 0.000000e+00 : f32
    %15 = vector.broadcast %cst_11 : f32 to vector<8x128xf32>
    %16 = arith.maximumf %14, %15 : vector<8x128xf32>
    %17 = arith.truncf %16 : vector<8x128xf32> to vector<8x128xbf16>
    %c0_12 = arith.constant 0 : index
    %c0_13 = arith.constant 0 : index
    %18 = vector.load %arg6[%c0_12, %c0_13] : memref<128x128xbf16, #tpu.memory_space<vmem>>, vector<128x128xbf16>
    %cst_14 = arith.constant dense<0.000000e+00> : vector<8x128xf32>
    %19 = tpu.matmul %17, %18, %cst_14 {dimension_numbers = #tpu.dot_dimension_numbers<[1], [0], [0], [1], [0, 0, 1, 1], [], []>} : vector<8x128xbf16>, vector<128x128xbf16>, vector<8x128xf32> -> vector<8x128xf32>
    %c0_15 = arith.constant 0 : index
    %c0_16 = arith.constant 0 : index
    %20 = vector.load %arg7[%c0_15, %c0_16] : memref<1x128xf32, #tpu.memory_space<vmem>>, vector<1x128xf32>
    %21 = vector.broadcast %20 : vector<1x128xf32> to vector<8x128xf32>
    %22 = arith.addf %19, %21 : vector<8x128xf32>
    %cst_17 = arith.constant 0.000000e+00 : f32
    %23 = vector.broadcast %cst_17 : f32 to vector<8x128xf32>
    %24 = arith.maximumf %22, %23 : vector<8x128xf32>
    %25 = arith.truncf %24 : vector<8x128xf32> to vector<8x128xbf16>
    %c0_18 = arith.constant 0 : index
    %c0_19 = arith.constant 0 : index
    %26 = vector.load %arg8[%c0_18, %c0_19] : memref<128x128xbf16, #tpu.memory_space<vmem>>, vector<128x128xbf16>
    %cst_20 = arith.constant dense<0.000000e+00> : vector<8x128xf32>
    %27 = tpu.matmul %25, %26, %cst_20 {dimension_numbers = #tpu.dot_dimension_numbers<[1], [0], [0], [1], [0, 0, 1, 1], [], []>} : vector<8x128xbf16>, vector<128x128xbf16>, vector<8x128xf32> -> vector<8x128xf32>
    %c0_21 = arith.constant 0 : index
    %c0_22 = arith.constant 0 : index
    %28 = vector.load %arg9[%c0_21, %c0_22] : memref<1x128xf32, #tpu.memory_space<vmem>>, vector<1x128xf32>
    %29 = vector.broadcast %28 : vector<1x128xf32> to vector<8x128xf32>
    %30 = arith.addf %27, %29 : vector<8x128xf32>
    %31 = arith.truncf %30 : vector<8x128xf32> to vector<8x128xbf16>
    %c0_23 = arith.constant 0 : index
    %c0_24 = arith.constant 0 : index
    %32 = vector.load %arg10[%c0_23, %c0_24] : memref<8x128xbf16, #tpu.memory_space<vmem>>, vector<8x128xbf16>
    tpu.vector_store %arg10[%c0_23, %c0_24], %31 {strides = array<i32>} : memref<8x128xbf16, #tpu.memory_space<vmem>>, vector<8x128xbf16>,
    return
  }
  func.func @transform_0(%arg0: i32) -> (i32, i32) {
    %c0_i32 = arith.constant 0 : i32
    %c0_i32_0 = arith.constant 0 : i32
    return %arg0, %c0_i32 : i32, i32
  }
  func.func @transform_1(%arg0: i32) -> (i32, i32) {
    %c0_i32 = arith.constant 0 : i32
    %c0_i32_0 = arith.constant 0 : i32
    %c0_i32_1 = arith.constant 0 : i32
    return %c0_i32, %c0_i32_0 : i32, i32
  }
  func.func @transform_2(%arg0: i32) -> (i32, i32) {
    %c0_i32 = arith.constant 0 : i32
    %c0_i32_0 = arith.constant 0 : i32
    %c0_i32_1 = arith.constant 0 : i32
    return %c0_i32, %c0_i32_0 : i32, i32
  }
  func.func @transform_3(%arg0: i32) -> (i32, i32) {
    %c0_i32 = arith.constant 0 : i32
    %c0_i32_0 = arith.constant 0 : i32
    %c0_i32_1 = arith.constant 0 : i32
    return %c0_i32, %c0_i32_0 : i32, i32
  }
  func.func @transform_4(%arg0: i32) -> (i32, i32) {
    %c0_i32 = arith.constant 0 : i32
    %c0_i32_0 = arith.constant 0 : i32
    %c0_i32_1 = arith.constant 0 : i32
    return %c0_i32, %c0_i32_0 : i32, i32
  }
  func.func @transform_5(%arg0: i32) -> (i32, i32) {
    %c0_i32 = arith.constant 0 : i32
    %c0_i32_0 = arith.constant 0 : i32
    %c0_i32_1 = arith.constant 0 : i32
    return %c0_i32, %c0_i32_0 : i32, i32
  }
  func.func @transform_6(%arg0: i32) -> (i32, i32) {
    %c0_i32 = arith.constant 0 : i32
    %c0_i32_0 = arith.constant 0 : i32
    %c0_i32_1 = arith.constant 0 : i32
    return %c0_i32, %c0_i32_0 : i32, i32
  }
  func.func @transform_7(%arg0: i32) -> (i32, i32) {
    %c0_i32 = arith.constant 0 : i32
    %c0_i32_0 = arith.constant 0 : i32
    %c0_i32_1 = arith.constant 0 : i32
    return %c0_i32, %c0_i32_0 : i32, i32
  }
  func.func @transform_8(%arg0: i32) -> (i32, i32) {
    %c0_i32 = arith.constant 0 : i32
    %c0_i32_0 = arith.constant 0 : i32
    %c0_i32_1 = arith.constant 0 : i32
    return %c0_i32, %c0_i32_0 : i32, i32
  }
  func.func @transform_9(%arg0: i32) -> (i32, i32) {
    %c0_i32 = arith.constant 0 : i32
    %c0_i32_0 = arith.constant 0 : i32
    return %arg0, %c0_i32 : i32, i32
  }
}

module attributes {stable_mosaic.version = 11 : i64} {
  func.func @_mlp_kernel(%arg0: i32, %arg1: memref<8x32xf32, #tpu.memory_space<vmem>>, %arg2: memref<32x128xbf16, #tpu.memory_space<vmem>>, %arg3: memref<1x128xf32, #tpu.memory_space<vmem>>, %arg4: memref<128x128xbf16, #tpu.memory_space<vmem>>, %arg5: memref<1x128xf32, #tpu.memory_space<vmem>>, %arg6: memref<128x128xbf16, #tpu.memory_space<vmem>>, %arg7: memref<1x128xf32, #tpu.memory_space<vmem>>, %arg8: memref<128x128xbf16, #tpu.memory_space<vmem>>, %arg9: memref<1x128xf32, #tpu.memory_space<vmem>>, %arg10: memref<8x128xbf16, #tpu.memory_space<vmem>>) attributes {dimension_semantics = [#tpu.dimension_semantics<parallel>], iteration_bounds = array<i64: 1>, scalar_prefetch = 0 : i64, scratch_operands = 0 : i64, tpu.core_type = #tpu.core_type<tc>, window_params = [{transform_indices = @transform_0, window_bounds = array<i64: 8, 32>}, {pipeline_mode = #tpu.pipeline_mode<synchronous>, transform_indices = @transform_1, window_bounds = array<i64: 32, 128>}, {pipeline_mode = #tpu.pipeline_mode<synchronous>, transform_indices = @transform_2, window_bounds = array<i64: 1, 128>}, {pipeline_mode = #tpu.pipeline_mode<synchronous>, transform_indices = @transform_3, window_bounds = array<i64: 128, 128>}, {pipeline_mode = #tpu.pipeline_mode<synchronous>, transform_indices = @transform_4, window_bounds = array<i64: 1, 128>}, {pipeline_mode = #tpu.pipeline_mode<synchronous>, transform_indices = @transform_5, window_bounds = array<i64: 128, 128>}, {pipeline_mode = #tpu.pipeline_mode<synchronous>, transform_indices = @transform_6, window_bounds = array<i64: 1, 128>}, {pipeline_mode = #tpu.pipeline_mode<synchronous>, transform_indices = @transform_7, window_bounds = array<i64: 128, 128>}, {pipeline_mode = #tpu.pipeline_mode<synchronous>, transform_indices = @transform_8, window_bounds = array<i64: 1, 128>}, {transform_indices = @transform_9, window_bounds = array<i64: 8, 128>}]} {
    %c0 = arith.constant 0 : index
    %c0_0 = arith.constant 0 : index
    %0 = vector.load %arg1[%c0, %c0_0] : memref<8x32xf32, #tpu.memory_space<vmem>>, vector<8x32xf32>
    %1 = arith.truncf %0 : vector<8x32xf32> to vector<8x32xbf16>
    %c0_1 = arith.constant 0 : index
    %c0_2 = arith.constant 0 : index
    %2 = vector.load %arg2[%c0_1, %c0_2] : memref<32x128xbf16, #tpu.memory_space<vmem>>, vector<32x128xbf16>
    %cst = arith.constant dense<0.000000e+00> : vector<8x128xf32>
    %3 = tpu.matmul %1, %2, %cst {dimension_numbers = #tpu.dot_dimension_numbers<[1], [0], [0], [1], [0, 0, 1, 1], [], []>} : vector<8x32xbf16>, vector<32x128xbf16>, vector<8x128xf32> -> vector<8x128xf32>
    %c0_3 = arith.constant 0 : index
    %c0_4 = arith.constant 0 : index
    %4 = vector.load %arg3[%c0_3, %c0_4] : memref<1x128xf32, #tpu.memory_space<vmem>>, vector<1x128xf32>
    %5 = vector.broadcast %4 : vector<1x128xf32> to vector<8x128xf32>
    %6 = arith.addf %3, %5 : vector<8x128xf32>
    %cst_5 = arith.constant 0.000000e+00 : f32
    %7 = vector.broadcast %cst_5 : f32 to vector<8x128xf32>
    %8 = arith.maximumf %6, %7 : vector<8x128xf32>
    %9 = arith.truncf %8 : vector<8x128xf32> to vector<8x128xbf16>
    %c0_6 = arith.constant 0 : index
    %c0_7 = arith.constant 0 : index
    %10 = vector.load %arg4[%c0_6, %c0_7] : memref<128x128xbf16, #tpu.memory_space<vmem>>, vector<128x128xbf16>
    %cst_8 = arith.constant dense<0.000000e+00> : vector<8x128xf32>
    %11 = tpu.matmul %9, %10, %cst_8 {dimension_numbers = #tpu.dot_dimension_numbers<[1], [0], [0], [1], [0, 0, 1, 1], [], []>} : vector<8x128xbf16>, vector<128x128xbf16>, vector<8x128xf32> -> vector<8x128xf32>
    %c0_9 = arith.constant 0 : index
    %c0_10 = arith.constant 0 : index
    %12 = vector.load %arg5[%c0_9, %c0_10] : memref<1x128xf32, #tpu.memory_space<vmem>>, vector<1x128xf32>
    %13 = vector.broadcast %12 : vector<1x128xf32> to vector<8x128xf32>
    %14 = arith.addf %11, %13 : vector<8x128xf32>
    %cst_11 = arith.constant 0.000000e+00 : f32
    %15 = vector.broadcast %cst_11 : f32 to vector<8x128xf32>
    %16 = arith.maximumf %14, %15 : vector<8x128xf32>
    %17 = arith.truncf %16 : vector<8x128xf32> to vector<8x128xbf16>
    %c0_12 = arith.constant 0 : index
    %c0_13 = arith.constant 0 : index
    %18 = vector.load %arg6[%c0_12, %c0_13] : memref<128x128xbf16, #tpu.memory_space<vmem>>, vector<128x128xbf16>
    %cst_14 = arith.constant dense<0.000000e+00> : vector<8x128xf32>
    %19 = tpu.matmul %17, %18, %cst_14 {dimension_numbers = #tpu.dot_dimension_numbers<[1], [0], [0], [1], [0, 0, 1, 1], [], []>} : vector<8x128xbf16>, vector<128x128xbf16>, vector<8x128xf32> -> vector<8x128xf32>
    %c0_15 = arith.constant 0 : index
    %c0_16 = arith.constant 0 : index
    %20 = vector.load %arg7[%c0_15, %c0_16] : memref<1x128xf32, #tpu.memory_space<vmem>>, vector<1x128xf32>
    %21 = vector.broadcast %20 : vector<1x128xf32> to vector<8x128xf32>
    %22 = arith.addf %19, %21 : vector<8x128xf32>
    %cst_17 = arith.constant 0.000000e+00 : f32
    %23 = vector.broadcast %cst_17 : f32 to vector<8x128xf32>
    %24 = arith.maximumf %22, %23 : vector<8x128xf32>
    %25 = arith.truncf %24 : vector<8x128xf32> to vector<8x128xbf16>
    %c0_18 = arith.constant 0 : index
    %c0_19 = arith.constant 0 : index
    %26 = vector.load %arg8[%c0_18, %c0_19] : memref<128x128xbf16, #tpu.memory_space<vmem>>, vector<128x128xbf16>
    %cst_20 = arith.constant dense<0.000000e+00> : vector<8x128xf32>
    %27 = tpu.matmul %25, %26, %cst_20 {dimension_numbers = #tpu.dot_dimension_numbers<[1], [0], [0], [1], [0, 0, 1, 1], [], []>} : vector<8x128xbf16>, vector<128x128xbf16>, vector<8x128xf32> -> vector<8x128xf32>
    %c0_21 = arith.constant 0 : index
    %c0_22 = arith.constant 0 : index
    %28 = vector.load %arg9[%c0_21, %c0_22] : memref<1x128xf32, #tpu.memory_space<vmem>>, vector<1x128xf32>
    %29 = vector.broadcast %28 : vector<1x128xf32> to vector<8x128xf32>
    %30 = arith.addf %27, %29 : vector<8x128xf32>
    %31 = arith.truncf %30 : vector<8x128xf32> to vector<8x128xbf16>
    %c0_23 = arith.constant 0 : index
    %c0_24 = arith.constant 0 : index
    %32 = vector.load %arg10[%c0_23, %c0_24] : memref<8x128xbf16, #tpu.memory_space<vmem>>, vector<8x128xbf16>
    tpu.vector_store %arg10[%c0_23, %c0_24], %31 {strides = array<i32>} : memref<8x128xbf16, #tpu.memory_space<vmem>>, vector<8x128xbf16>,
    return
  }
  func.func @transform_0(%arg0: i32) -> (i32, i32) {
    %c0_i32 = arith.constant 0 : i32
    %c0_i32_0 = arith.constant 0 : i32
    return %arg0, %c0_i32 : i32, i32
  }
  func.func @transform_1(%arg0: i32) -> (i32, i32) {
    %c0_i32 = arith.constant 0 : i32
    %c0_i32_0 = arith.constant 0 : i32
    %c0_i32_1 = arith.constant 0 : i32
    return %c0_i32, %c0_i32_0 : i32, i32
  }
  func.func @transform_2(%arg0: i32) -> (i32, i32) {
    %c0_i32 = arith.constant 0 : i32
    %c0_i32_0 = arith.constant 0 : i32
    %c0_i32_1 = arith.constant 0 : i32
    return %c0_i32, %c0_i32_0 : i32, i32
  }
  func.func @transform_3(%arg0: i32) -> (i32, i32) {
    %c0_i32 = arith.constant 0 : i32
    %c0_i32_0 = arith.constant 0 : i32
    %c0_i32_1 = arith.constant 0 : i32
    return %c0_i32, %c0_i32_0 : i32, i32
  }
  func.func @transform_4(%arg0: i32) -> (i32, i32) {
    %c0_i32 = arith.constant 0 : i32
    %c0_i32_0 = arith.constant 0 : i32
    %c0_i32_1 = arith.constant 0 : i32
    return %c0_i32, %c0_i32_0 : i32, i32
  }
  func.func @transform_5(%arg0: i32) -> (i32, i32) {
    %c0_i32 = arith.constant 0 : i32
    %c0_i32_0 = arith.constant 0 : i32
    %c0_i32_1 = arith.constant 0 : i32
    return %c0_i32, %c0_i32_0 : i32, i32
  }
  func.func @transform_6(%arg0: i32) -> (i32, i32) {
    %c0_i32 = arith.constant 0 : i32
    %c0_i32_0 = arith.constant 0 : i32
    %c0_i32_1 = arith.constant 0 : i32
    return %c0_i32, %c0_i32_0 : i32, i32
  }
  func.func @transform_7(%arg0: i32) -> (i32, i32) {
    %c0_i32 = arith.constant 0 : i32
    %c0_i32_0 = arith.constant 0 : i32
    %c0_i32_1 = arith.constant 0 : i32
    return %c0_i32, %c0_i32_0 : i32, i32
  }
  func.func @transform_8(%arg0: i32) -> (i32, i32) {
    %c0_i32 = arith.constant 0 : i32
    %c0_i32_0 = arith.constant 0 : i32
    %c0_i32_1 = arith.constant 0 : i32
    return %c0_i32, %c0_i32_0 : i32, i32
  }
  func.func @transform_9(%arg0: i32) -> (i32, i32) {
    %c0_i32 = arith.constant 0 : i32
    %c0_i32_0 = arith.constant 0 : i32
    return %arg0, %c0_i32 : i32, i32
  }
}

</mosaic_0001>

<bundles_post_ra>
// kernel: tpu_custom_call.1
= control target key start
LH: loop header
LB: loop body
LE: loop exit
PB: predicated region body
PF: predicated region fallthrough
CT: control target
= control target key end

     0   :  { %14 = vsyncpa [#allocation3], 0  ;;  %s802_s0 = inlined_call_operand.hbm [shape: f32[8,32], index: 0, kind: input, shape index: {}]   ;;  %s803_s1 = inlined_call_operand.hbm [shape: bf16[32,128], index: 1, kind: input, shape index: {}]   ;;  %s804_s2 = inlined_call_operand.vmem [shape: f32[1,128], index: 2, kind: input, shape index: {}]   ;;  %s805_s3 = inlined_call_operand.hbm [shape: bf16[128,128], index: 3, kind: input, shape index: {}]   ;;  %s806_s4 = inlined_call_operand.vmem [shape: f32[1,128], index: 4, kind: input, shape index: {}]   ;;  %s807_s5 = inlined_call_operand.hbm [shape: bf16[128,128], index: 5, kind: input, shape index: {}]   ;;  %s808_s6 = inlined_call_operand.vmem [shape: f32[1,128], index: 6, kind: input, shape index: {}]   ;;  %s809_s7 = inlined_call_operand.hbm [shape: bf16[128,128], index: 7, kind: input, shape index: {}]   ;;  %s810_s8 = inlined_call_operand.vmem [shape: f32[1,128], index: 8, kind: input, shape index: {}]   ;;  %s811_s9 = inlined_call_operand.hbm [shape: bf16[8,128], index: 9, kind: output, shape index: {}]  }
   0x1   :  { %15 = vsyncpa [#allocation6], 0 }
   0x2   :  { %16 = vsyncpa [#allocation9], 0  ;;  %s33_s11 = sshll.u32 %s803_s1, 4  ;;  %s34_s11 = int_to_ptr.hbm [resolvable:$true] %s33_s11 }
   0x3   :  { %17 = vsyncpa [#allocation4], 0  ;;  %s714_s12 = smov [#allocation5]   ;;  %s63_s16 = sshll.u32 %s807_s5, 4  ;;  %s64_s16 = int_to_ptr.hbm [resolvable:$true] %s63_s16 }
   0x4   :  { %s35_s13 = sshll.u32 %s714_s12, 4  ;;  %s715_s17 = smov 64   ;;  %s36_s13 = int_to_ptr.vmem [resolvable:$true] %s35_s13 }
   0x5   :  { %s716_s18 = smov 4   ;;  %s717_s19 = smov [#allocation8]  }
   0x6   :  { %41 = dma.hbm_to_vmem [thread:$0]  %s34_s11, 256, %s36_s13, [#allocation6], %s715_s17, %s715_s17, %s716_s18  }
   0x7   :  { %s65_s20 = sshll.u32 %s717_s19, 4  ;;  %s23_s23 = sshll.u32 %s802_s0, 4  ;;  %s66_s20 = int_to_ptr.vmem [resolvable:$true] %s65_s20  ;;  %s24_s23 = int_to_ptr.hbm [resolvable:$true] %s23_s23 }
   0x8   :  { %71 = dma.hbm_to_vmem [thread:$0]  %s64_s16, 1024, %s66_s20, [#allocation9], %s715_s17, %s715_s17, %s716_s18  }
   0x9   :  { %s48_s25 = sshll.u32 %s805_s3, 4  ;;  %s718_s26 = smov [#allocation2]   ;;  %s49_s25 = int_to_ptr.hbm [resolvable:$true] %s48_s25 }
   0xa   :  { %s25_s27 = sshll.u32 %s718_s26, 4  ;;  %s719_s5 = smov [#allocation7]   ;;  %s26_s27 = int_to_ptr.vmem [resolvable:$true] %s25_s27 }
   0xb   :  { %28 = dma.hbm_to_vmem [thread:$0]  %s24_s23, 128, %s26_s27, [#allocation3]  }
   0xc   :  { %s50_s28 = sshll.u32 %s719_s5, 4  ;;  %s78_s10 = sshll.u32 %s809_s7, 4  ;;  %s51_s28 = int_to_ptr.vmem [resolvable:$true] %s50_s28  ;;  %s79_s10 = int_to_ptr.hbm [resolvable:$true] %s78_s10 }
   0xd   :  { %56 = dma.hbm_to_vmem [thread:$0]  %s49_s25, 1024, %s51_s28, [#allocation6], %s715_s17, %s715_s17, %s716_s18  }
   0xe   :  { %s720_s0 = smov [#allocation10]  }
   0xf   :  { %s80_s11 = sshll.u32 %s720_s0, 4  ;;  %s81_s11 = int_to_ptr.vmem [resolvable:$true] %s80_s11 }
  0x10   :  { %86 = dma.hbm_to_vmem [thread:$0]  %s79_s10, 1024, %s81_s11, [#allocation9], %s715_s17, %s715_s17, %s716_s18  }
  0x11   :  { %706 = dma.done.wait [#allocation3], 128  }
  0x12   :  { %707 = vsyncadd [#allocation3], 4294967168 }
  0x13   :  { %708 = dma.done.wait [#allocation6], 1280  }
  0x14   :  { %709 = vsyncadd [#allocation6], 4294966016 }
  0x15   :  { %710 = dma.done.wait [#allocation9], 2048  }
  0x16   :  { %711 = vsyncadd [#allocation9], 4294965248  ;;  %v525_v0 = vld [vmem:[#allocation5 + $0x8] sm:$0xff]  ;;  %v524_v2 = vld [vmem:[#allocation5] sm:$0xff]  ;;  %vm132_vm0 = vcmask 261120   ;;  %s721_s16 = smov [#allocation11]  }
  0x17   :  { %v533_v1 = vld [vmem:[#allocation7 + $0x38] sm:$0xff]  ;;  %142 = vmatpush.bf16.msra.mxu0 %v525_v0  ;;  %v110_v3 = vld [vmem:[#allocation2] sm:$0xff]  ;;  %v532_v4 = vld [vmem:[#allocation7 + $0x30] sm:$0xff]  ;;  %s405_s17 = sshll.u32 %s721_s16, 4  ;;  %s407_s20 = sshll.u32 %s811_s9, 4  ;;  %s406_s17 = int_to_ptr.vmem [resolvable:$true] %s405_s17  ;;  %s408_s20 = int_to_ptr.hbm [resolvable:$true] %s407_s20 }
  0x18   :  { %219 = vmatpush.bf16.msra.mxu1 %v533_v1  ;;  %v111_v5 = vpack.c.bf16 %v110_v3, %v110_v3  ;;  %v531_v6 = vld [vmem:[#allocation7 + $0x28] sm:$0xff]  ;;  %v530_v7 = vld [vmem:[#allocation7 + $0x20] sm:$0xff]  ;;  %v529_v8 = vld [vmem:[#allocation7 + $0x18] sm:$0xff] }
  0x19   :  { %v528_v9 = vld [vmem:[#allocation7 + $0x10] sm:$0xff]  ;;  %v527_v10 = vld [vmem:[#allocation7 + $0x8] sm:$0xff]  ;;  %v526_v11 = vld [vmem:[#allocation7] sm:$0xff] }
  0x1a   :  { %v541_v12 = vld [vmem:[#allocation8 + $0x38] sm:$0xff]  ;;  %v540_v13 = vld [vmem:[#allocation8 + $0x30] sm:$0xff]  ;;  %v539_v14 = vld [vmem:[#allocation8 + $0x28] sm:$0xff] }
  0x1b   :  { %143 = vmatpush.bf16.msra.mxu0 %v524_v2  ;;  %302 = vmatpush.bf16.msra.mxu2 %v541_v12  ;;  %v538_v15 = vld [vmem:[#allocation8 + $0x20] sm:$0xff]  ;;  %v537_v16 = vld [vmem:[#allocation8 + $0x18] sm:$0xff]  ;;  %v536_v17 = vld [vmem:[#allocation8 + $0x10] sm:$0xff] }
  0x1c   :  { %220 = vmatpush.bf16.msra.mxu1 %v532_v4  ;;  %v558_v18 = vld [vmem:[%s804_s2] ss:$0 sm:$0xff]  ;;  %v534_v25 = vld [vmem:[#allocation8] sm:$0xff]  ;;  %v549_v26 = vld [vmem:[#allocation10 + $0x38] sm:$0xff] }
  0x1d   :  { %v535_v24 = vld [vmem:[#allocation8 + $0x8] sm:$0xff]  ;;  %385 = vmatpush.bf16.msra.mxu3 %v549_v26  ;;  %v548_v27 = vld [vmem:[#allocation10 + $0x30] sm:$0xff]  ;;  %v546_v29 = vld [vmem:[#allocation10 + $0x20] sm:$0xff] }
  0x1e   :  { %427 = vmatmul.msk.bf16.vlgmr.msra.gmra.mxu0 %vm132_vm0, %v111_v5  ;;  %v547_v28 = vld [vmem:[#allocation10 + $0x28] sm:$0xff]  ;;  %v545_v30 = vld [vmem:[#allocation10 + $0x18] sm:$0xff]  ;;  %v544_v31 = vld [vmem:[#allocation10 + $0x10] sm:$0xff] }
  0x1f   :  { %303 = vmatpush.bf16.msra.mxu2 %v540_v13  ;;  %v559_v32 = vld [vmem:[%s806_s4] ss:$0 sm:$0xff]  ;;  %v542_v39 = vld [vmem:[#allocation10] sm:$0xff] }
  0x20   :  { %221 = vmatpush.bf16.msra.mxu1 %v531_v6  ;;  %v543_v38 = vld [vmem:[#allocation10 + $0x8] sm:$0xff] }
  0x21   :  { %386 = vmatpush.bf16.msra.mxu3 %v548_v27  ;;  %v560_v40 = vld [vmem:[%s808_s6] ss:$0 sm:$0xff] }
  0x22   :  { %v561_v46 = vld [vmem:[%s810_s8] ss:$0 sm:$0xff] }
  0x23   :  { %304 = vmatpush.bf16.msra.mxu2 %v539_v14 }
  0x24   :  { %222 = vmatpush.bf16.msra.mxu1 %v530_v7 }
  0x25   :  { %387 = vmatpush.bf16.msra.mxu3 %v547_v28 }
  0x27   :  { %305 = vmatpush.bf16.msra.mxu2 %v538_v15 }
  0x28   :  { %223 = vmatpush.bf16.msra.mxu1 %v529_v8 }
  0x29   :  { %388 = vmatpush.bf16.msra.mxu3 %v546_v29 }
  0x2b   :  { %306 = vmatpush.bf16.msra.mxu2 %v537_v16 }
  0x2c   :  { %224 = vmatpush.bf16.msra.mxu1 %v528_v9 }
  0x2d   :  { %389 = vmatpush.bf16.msra.mxu3 %v545_v30 }
  0x2f   :  { %307 = vmatpush.bf16.msra.mxu2 %v536_v17 }
  0x30   :  { %225 = vmatpush.bf16.msra.mxu1 %v527_v10 }
  0x31   :  { %390 = vmatpush.bf16.msra.mxu3 %v544_v31 }
  0x33   :  { %308 = vmatpush.bf16.msra.mxu2 %v535_v24 }
  0x34   :  { %226 = vmatpush.bf16.msra.mxu1 %v526_v11 }
  0x35   :  { %391 = vmatpush.bf16.msra.mxu3 %v543_v38 }
  0x37   :  { %309 = vmatpush.bf16.msra.mxu2 %v534_v25 }
  0x39   :  { %392 = vmatpush.bf16.msra.mxu3 %v542_v39 }
  0x9b   :  { %v145_v19 = vpop.f32.mrf.mxu0 }
  0x9c   :  { %v146_v20 = vadd.f32 %v558_v18, %v145_v19 }
  0x9e   :  { %v149_v21 = vmax.f32 %v146_v20, 0.0 }
  0xa0   :  { %v150_v22 = vpack.c.bf16 %v149_v21, %v149_v21 }
  0xa2   :  { %227 = vmatmul.bf16.vlgmr.msra.gmra.mxu1 %v150_v22 }
  0xa3   :  { %v147_v23 = vpop.f32.mrf.mxu0 }
 0x11f   :  { %v228_v33 = vpop.f32.mrf.mxu1 }
 0x120   :  { %v229_v34 = vadd.f32 %v559_v32, %v228_v33 }
 0x122   :  { %v232_v35 = vmax.f32 %v229_v34, 0.0 }
 0x124   :  { %v233_v36 = vpack.c.bf16 %v232_v35, %v232_v35 }
 0x126   :  { %310 = vmatmul.bf16.vlgmr.msra.gmra.mxu2 %v233_v36 }
 0x127   :  { %v230_v37 = vpop.f32.mrf.mxu1 }
 0x1a9   :  { %v311_v41 = vpop.f32.mrf.mxu2 }
 0x1aa   :  { %v312_v42 = vadd.f32 %v560_v40, %v311_v41 }
 0x1ac   :  { %v315_v43 = vmax.f32 %v312_v42, 0.0 }
 0x1ae   :  { %v316_v44 = vpack.c.bf16 %v315_v43, %v315_v43 }
 0x1b0   :  { %393 = vmatmul.bf16.vlgmr.msra.gmra.mxu3 %v316_v44 }
 0x1b1   :  { %v313_v45 = vpop.f32.mrf.mxu2 }
 0x233   :  { %v394_v47 = vpop.f32.mrf.mxu3 }
 0x234   :  { %v395_v48 = vadd.f32 %v561_v46, %v394_v47 }
 0x236   :  { %v398_v49 = vpack.c.bf16 %v395_v48, %v395_v48 }
 0x238   :  { %399 = vst [vmem:[#allocation11] sm:$0xf] %v398_v49 }
 0x239   :  { %410 = dma.vmem_to_hbm [thread:$0]  %s406_s17, 64, %s408_s20, [#allocation4]  }
 0x23b   :  { %v396_v50 = vpop.f32.mrf.mxu3 }
 0x23c   :  { %712 = dma.done.wait [#allocation4], 64  }
 0x23d   :  { %713 = vsyncadd [#allocation4], 4294967232 }
 0x23e   :  { %415 = vsyncpa [#allocation3], 1 }
 0x23f   :  { %416 = vsyncpa [#allocation6], 1 }
 0x240   :  { %417 = vsyncpa [#allocation9], 1 }
 0x241   :  { %418 = vsyncpa [#allocation4], 1 }

// kernel: tpu_custom_call.1
= control target key start
LH: loop header
LB: loop body
LE: loop exit
PB: predicated region body
PF: predicated region fallthrough
CT: control target
= control target key end

     0   :  { %14 = vsyncpa [#allocation3], 0  ;;  %s802_s0 = inlined_call_operand.hbm [shape: f32[8,32], index: 0, kind: input, shape index: {}]   ;;  %s803_s1 = inlined_call_operand.hbm [shape: bf16[32,128], index: 1, kind: input, shape index: {}]   ;;  %s804_s2 = inlined_call_operand.vmem [shape: f32[1,128], index: 2, kind: input, shape index: {}]   ;;  %s805_s3 = inlined_call_operand.hbm [shape: bf16[128,128], index: 3, kind: input, shape index: {}]   ;;  %s806_s4 = inlined_call_operand.vmem [shape: f32[1,128], index: 4, kind: input, shape index: {}]   ;;  %s807_s5 = inlined_call_operand.hbm [shape: bf16[128,128], index: 5, kind: input, shape index: {}]   ;;  %s808_s6 = inlined_call_operand.vmem [shape: f32[1,128], index: 6, kind: input, shape index: {}]   ;;  %s809_s7 = inlined_call_operand.hbm [shape: bf16[128,128], index: 7, kind: input, shape index: {}]   ;;  %s810_s8 = inlined_call_operand.vmem [shape: f32[1,128], index: 8, kind: input, shape index: {}]   ;;  %s811_s9 = inlined_call_operand.hbm [shape: bf16[8,128], index: 9, kind: output, shape index: {}]  }
   0x1   :  { %15 = vsyncpa [#allocation6], 0 }
   0x2   :  { %16 = vsyncpa [#allocation9], 0  ;;  %s33_s11 = sshll.u32 %s803_s1, 4  ;;  %s34_s11 = int_to_ptr.hbm [resolvable:$true] %s33_s11 }
   0x3   :  { %17 = vsyncpa [#allocation4], 0  ;;  %s714_s12 = smov [#allocation5]   ;;  %s63_s16 = sshll.u32 %s807_s5, 4  ;;  %s64_s16 = int_to_ptr.hbm [resolvable:$true] %s63_s16 }
   0x4   :  { %s35_s13 = sshll.u32 %s714_s12, 4  ;;  %s715_s17 = smov 64   ;;  %s36_s13 = int_to_ptr.vmem [resolvable:$true] %s35_s13 }
   0x5   :  { %s716_s18 = smov 4   ;;  %s717_s19 = smov [#allocation8]  }
   0x6   :  { %41 = dma.hbm_to_vmem [thread:$0]  %s34_s11, 256, %s36_s13, [#allocation6], %s715_s17, %s715_s17, %s716_s18  }
   0x7   :  { %s65_s20 = sshll.u32 %s717_s19, 4  ;;  %s23_s23 = sshll.u32 %s802_s0, 4  ;;  %s66_s20 = int_to_ptr.vmem [resolvable:$true] %s65_s20  ;;  %s24_s23 = int_to_ptr.hbm [resolvable:$true] %s23_s23 }
   0x8   :  { %71 = dma.hbm_to_vmem [thread:$0]  %s64_s16, 1024, %s66_s20, [#allocation9], %s715_s17, %s715_s17, %s716_s18  }
   0x9   :  { %s48_s25 = sshll.u32 %s805_s3, 4  ;;  %s718_s26 = smov [#allocation2]   ;;  %s49_s25 = int_to_ptr.hbm [resolvable:$true] %s48_s25 }
   0xa   :  { %s25_s27 = sshll.u32 %s718_s26, 4  ;;  %s719_s5 = smov [#allocation7]   ;;  %s26_s27 = int_to_ptr.vmem [resolvable:$true] %s25_s27 }
   0xb   :  { %28 = dma.hbm_to_vmem [thread:$0]  %s24_s23, 128, %s26_s27, [#allocation3]  }
   0xc   :  { %s50_s28 = sshll.u32 %s719_s5, 4  ;;  %s78_s10 = sshll.u32 %s809_s7, 4  ;;  %s51_s28 = int_to_ptr.vmem [resolvable:$true] %s50_s28  ;;  %s79_s10 = int_to_ptr.hbm [resolvable:$true] %s78_s10 }
   0xd   :  { %56 = dma.hbm_to_vmem [thread:$0]  %s49_s25, 1024, %s51_s28, [#allocation6], %s715_s17, %s715_s17, %s716_s18  }
   0xe   :  { %s720_s0 = smov [#allocation10]  }
   0xf   :  { %s80_s11 = sshll.u32 %s720_s0, 4  ;;  %s81_s11 = int_to_ptr.vmem [resolvable:$true] %s80_s11 }
  0x10   :  { %86 = dma.hbm_to_vmem [thread:$0]  %s79_s10, 1024, %s81_s11, [#allocation9], %s715_s17, %s715_s17, %s716_s18  }
  0x11   :  { %706 = dma.done.wait [#allocation3], 128  }
  0x12   :  { %707 = vsyncadd [#allocation3], 4294967168 }
  0x13   :  { %708 = dma.done.wait [#allocation6], 1280  }
  0x14   :  { %709 = vsyncadd [#allocation6], 4294966016 }
  0x15   :  { %710 = dma.done.wait [#allocation9], 2048  }
  0x16   :  { %711 = vsyncadd [#allocation9], 4294965248  ;;  %v525_v0 = vld [vmem:[#allocation5 + $0x8] sm:$0xff]  ;;  %v524_v2 = vld [vmem:[#allocation5] sm:$0xff]  ;;  %vm132_vm0 = vcmask 261120   ;;  %s721_s16 = smov [#allocation11]  }
  0x17   :  { %v533_v1 = vld [vmem:[#allocation7 + $0x38] sm:$0xff]  ;;  %142 = vmatpush.bf16.msra.mxu0 %v525_v0  ;;  %v110_v3 = vld [vmem:[#allocation2] sm:$0xff]  ;;  %v532_v4 = vld [vmem:[#allocation7 + $0x30] sm:$0xff]  ;;  %s405_s17 = sshll.u32 %s721_s16, 4  ;;  %s407_s20 = sshll.u32 %s811_s9, 4  ;;  %s406_s17 = int_to_ptr.vmem [resolvable:$true] %s405_s17  ;;  %s408_s20 = int_to_ptr.hbm [resolvable:$true] %s407_s20 }
  0x18   :  { %219 = vmatpush.bf16.msra.mxu1 %v533_v1  ;;  %v111_v5 = vpack.c.bf16 %v110_v3, %v110_v3  ;;  %v531_v6 = vld [vmem:[#allocation7 + $0x28] sm:$0xff]  ;;  %v530_v7 = vld [vmem:[#allocation7 + $0x20] sm:$0xff]  ;;  %v529_v8 = vld [vmem:[#allocation7 + $0x18] sm:$0xff] }
  0x19   :  { %v528_v9 = vld [vmem:[#allocation7 + $0x10] sm:$0xff]  ;;  %v527_v10 = vld [vmem:[#allocation7 + $0x8] sm:$0xff]  ;;  %v526_v11 = vld [vmem:[#allocation7] sm:$0xff] }
  0x1a   :  { %v541_v12 = vld [vmem:[#allocation8 + $0x38] sm:$0xff]  ;;  %v540_v13 = vld [vmem:[#allocation8 + $0x30] sm:$0xff]  ;;  %v539_v14 = vld [vmem:[#allocation8 + $0x28] sm:$0xff] }
  0x1b   :  { %143 = vmatpush.bf16.msra.mxu0 %v524_v2  ;;  %302 = vmatpush.bf16.msra.mxu2 %v541_v12  ;;  %v538_v15 = vld [vmem:[#allocation8 + $0x20] sm:$0xff]  ;;  %v537_v16 = vld [vmem:[#allocation8 + $0x18] sm:$0xff]  ;;  %v536_v17 = vld [vmem:[#allocation8 + $0x10] sm:$0xff] }
  0x1c   :  { %220 = vmatpush.bf16.msra.mxu1 %v532_v4  ;;  %v558_v18 = vld [vmem:[%s804_s2] ss:$0 sm:$0xff]  ;;  %v534_v25 = vld [vmem:[#allocation8] sm:$0xff]  ;;  %v549_v26 = vld [vmem:[#allocation10 + $0x38] sm:$0xff] }
  0x1d   :  { %v535_v24 = vld [vmem:[#allocation8 + $0x8] sm:$0xff]  ;;  %385 = vmatpush.bf16.msra.mxu3 %v549_v26  ;;  %v548_v27 = vld [vmem:[#allocation10 + $0x30] sm:$0xff]  ;;  %v546_v29 = vld [vmem:[#allocation10 + $0x20] sm:$0xff] }
  0x1e   :  { %427 = vmatmul.msk.bf16.vlgmr.msra.gmra.mxu0 %vm132_vm0, %v111_v5  ;;  %v547_v28 = vld [vmem:[#allocation10 + $0x28] sm:$0xff]  ;;  %v545_v30 = vld [vmem:[#allocation10 + $0x18] sm:$0xff]  ;;  %v544_v31 = vld [vmem:[#allocation10 + $0x10] sm:$0xff] }
  0x1f   :  { %303 = vmatpush.bf16.msra.mxu2 %v540_v13  ;;  %v559_v32 = vld [vmem:[%s806_s4] ss:$0 sm:$0xff]  ;;  %v542_v39 = vld [vmem:[#allocation10] sm:$0xff] }
  0x20   :  { %221 = vmatpush.bf16.msra.mxu1 %v531_v6  ;;  %v543_v38 = vld [vmem:[#allocation10 + $0x8] sm:$0xff] }
  0x21   :  { %386 = vmatpush.bf16.msra.mxu3 %v548_v27  ;;  %v560_v40 = vld [vmem:[%s808_s6] ss:$0 sm:$0xff] }
  0x22   :  { %v561_v46 = vld [vmem:[%s810_s8] ss:$0 sm:$0xff] }
  0x23   :  { %304 = vmatpush.bf16.msra.mxu2 %v539_v14 }
  0x24   :  { %222 = vmatpush.bf16.msra.mxu1 %v530_v7 }
  0x25   :  { %387 = vmatpush.bf16.msra.mxu3 %v547_v28 }
  0x27   :  { %305 = vmatpush.bf16.msra.mxu2 %v538_v15 }
  0x28   :  { %223 = vmatpush.bf16.msra.mxu1 %v529_v8 }
  0x29   :  { %388 = vmatpush.bf16.msra.mxu3 %v546_v29 }
  0x2b   :  { %306 = vmatpush.bf16.msra.mxu2 %v537_v16 }
  0x2c   :  { %224 = vmatpush.bf16.msra.mxu1 %v528_v9 }
  0x2d   :  { %389 = vmatpush.bf16.msra.mxu3 %v545_v30 }
  0x2f   :  { %307 = vmatpush.bf16.msra.mxu2 %v536_v17 }
  0x30   :  { %225 = vmatpush.bf16.msra.mxu1 %v527_v10 }
  0x31   :  { %390 = vmatpush.bf16.msra.mxu3 %v544_v31 }
  0x33   :  { %308 = vmatpush.bf16.msra.mxu2 %v535_v24 }
  0x34   :  { %226 = vmatpush.bf16.msra.mxu1 %v526_v11 }
  0x35   :  { %391 = vmatpush.bf16.msra.mxu3 %v543_v38 }
  0x37   :  { %309 = vmatpush.bf16.msra.mxu2 %v534_v25 }
  0x39   :  { %392 = vmatpush.bf16.msra.mxu3 %v542_v39 }
  0x9b   :  { %v145_v19 = vpop.f32.mrf.mxu0 }
  0x9c   :  { %v146_v20 = vadd.f32 %v558_v18, %v145_v19 }
  0x9e   :  { %v149_v21 = vmax.f32 %v146_v20, 0.0 }
  0xa0   :  { %v150_v22 = vpack.c.bf16 %v149_v21, %v149_v21 }
  0xa2   :  { %227 = vmatmul.bf16.vlgmr.msra.gmra.mxu1 %v150_v22 }
  0xa3   :  { %v147_v23 = vpop.f32.mrf.mxu0 }
 0x11f   :  { %v228_v33 = vpop.f32.mrf.mxu1 }
 0x120   :  { %v229_v34 = vadd.f32 %v559_v32, %v228_v33 }
 0x122   :  { %v232_v35 = vmax.f32 %v229_v34, 0.0 }
 0x124   :  { %v233_v36 = vpack.c.bf16 %v232_v35, %v232_v35 }
 0x126   :  { %310 = vmatmul.bf16.vlgmr.msra.gmra.mxu2 %v233_v36 }
 0x127   :  { %v230_v37 = vpop.f32.mrf.mxu1 }
 0x1a9   :  { %v311_v41 = vpop.f32.mrf.mxu2 }
 0x1aa   :  { %v312_v42 = vadd.f32 %v560_v40, %v311_v41 }
 0x1ac   :  { %v315_v43 = vmax.f32 %v312_v42, 0.0 }
 0x1ae   :  { %v316_v44 = vpack.c.bf16 %v315_v43, %v315_v43 }
 0x1b0   :  { %393 = vmatmul.bf16.vlgmr.msra.gmra.mxu3 %v316_v44 }
 0x1b1   :  { %v313_v45 = vpop.f32.mrf.mxu2 }
 0x233   :  { %v394_v47 = vpop.f32.mrf.mxu3 }
 0x234   :  { %v395_v48 = vadd.f32 %v561_v46, %v394_v47 }
 0x236   :  { %v398_v49 = vpack.c.bf16 %v395_v48, %v395_v48 }
 0x238   :  { %399 = vst [vmem:[#allocation11] sm:$0xf] %v398_v49 }
 0x239   :  { %410 = dma.vmem_to_hbm [thread:$0]  %s406_s17, 64, %s408_s20, [#allocation4]  }
 0x23b   :  { %v396_v50 = vpop.f32.mrf.mxu3 }
 0x23c   :  { %712 = dma.done.wait [#allocation4], 64  }
 0x23d   :  { %713 = vsyncadd [#allocation4], 4294967232 }
 0x23e   :  { %415 = vsyncpa [#allocation3], 1 }
 0x23f   :  { %416 = vsyncpa [#allocation6], 1 }
 0x240   :  { %417 = vsyncpa [#allocation9], 1 }
 0x241   :  { %418 = vsyncpa [#allocation4], 1 }

</bundles_post_ra>
